<compile_context>
chip_gen: v7x
topology: tpu7x:2x2x1
jax: 0.10.0
libtpu: 0.0.40
codegen_flags: <defaults>
</compile_context>

<pallas_src>
import functools

import jax
import jax.numpy as jnp
from jax.experimental import pallas as pl
from jax.experimental.pallas import tpu as pltpu


_LANES = 512          # lane-dense last dim (multiple of 128)
_SUBLANES = 8
_MAX_TILE_ROWS = 1024  # (1024, 512) f32 tile = 2 MiB/input -> 2 in x 2 buf = 8 MiB VMEM
_MAX_CHUNKS = 8        # outer "parallel" grid axis (megacore sharding on v7x)


def _cdiv(a: int, b: int) -> int:
    return -(-a // b)


def _round_up(a: int, m: int) -> int:
    return _cdiv(a, m) * m


def _mse_partial_kernel(x_ref, y_ref, o_ref, acc_ref):
    """Accumulate sum((x - y)^2) for one chunk into a lane-dense (8, L) scratch."""
    s = pl.program_id(1)

    @pl.when(s == 0)
    def _():
        acc_ref[...] = jnp.zeros_like(acc_ref)

    # f32 upcast is required on all generations (no bf16 VALU on v5e) and the
    # kernel is HBM-bound anyway, so the casts are hidden behind DMA.
    d = x_ref[...].astype(jnp.float32) - y_ref[...].astype(jnp.float32)
    sq = d * d
    tm, lanes = sq.shape
    # Fold the row tile into (tm//8, 8, L): sublane groups stay intact (no data
    # movement), and the reduction over the leading axis is pure VPU adds —
    # no per-step XLU cross-lane reduce and no per-step scalar RMW.
    acc_ref[...] += jnp.sum(sq.reshape(tm // _SUBLANES, _SUBLANES, lanes), axis=0)

    @pl.when(s == pl.num_programs(1) - 1)
    def _():
        # Single lane-dense (8, L) store per chunk; the tiny cross-lane/sublane
        # reduction and the 1/N scale happen once in the wrapper.
        o_ref[0] = acc_ref[...]


def content_loss(x: jax.Array, y: jax.Array) -> jax.Array:
    """MSE loss (mean over all elements), matching torch.nn.functional.mse_loss."""
    assert x.shape == y.shape, "x and y must have the same shape"
    total = int(x.size)
    L = _LANES

    # --- static tiling decisions (all Python ints) ---
    rows = _cdiv(total, L)
    tile_rows = min(_MAX_TILE_ROWS, _round_up(rows, _SUBLANES))  # multiple of 8
    total_tiles = _cdiv(rows, tile_rows)

    # Largest power-of-two chunk count (<= _MAX_CHUNKS) whose zero-padding
    # waste stays under ~12.5% of the real tiles; falls back to 1 (no waste).
    num_chunks = 1
    c = _MAX_CHUNKS
    while c > 1:
        if c <= total_tiles:
            waste = _cdiv(total_tiles, c) * c - total_tiles
            if waste * 8 <= total_tiles:
                num_chunks = c
                break
        c //= 2
    steps = _cdiv(total_tiles, num_chunks)

    padded_rows = num_chunks * steps * tile_rows
    padded_len = padded_rows * L

    # --- lane-dense reshape (+ zero padding; zeros contribute 0 to the sum) ---
    xf = x.reshape(-1)
    yf = y.reshape(-1)
    pad = padded_len - total
    if pad:
        xf = jnp.pad(xf, (0, pad))
        yf = jnp.pad(yf, (0, pad))
    x2 = xf.reshape(padded_rows, L)
    y2 = yf.reshape(padded_rows, L)

    in_map = lambda cidx, sidx: (cidx * steps + sidx, 0)
    out_map = lambda cidx, sidx: (cidx, 0, 0)

    partials = pl.pallas_call(
        _mse_partial_kernel,
        out_shape=jax.ShapeDtypeStruct((num_chunks, _SUBLANES, L), jnp.float32),
        grid_spec=pltpu.PrefetchScalarGridSpec(
            num_scalar_prefetch=0,
            grid=(num_chunks, steps),
            in_specs=[
                pl.BlockSpec((tile_rows, L), in_map),
                pl.BlockSpec((tile_rows, L), in_map),
            ],
            out_specs=pl.BlockSpec((1, _SUBLANES, L), out_map),
            scratch_shapes=[pltpu.VMEM((_SUBLANES, L), jnp.float32)],
        ),
        compiler_params=pltpu.CompilerParams(
            dimension_semantics=("parallel", "arbitrary"),
            vmem_limit_bytes=32 << 20,  # ~8 MiB used; headroom on v5e/v6e/v7x
        ),
        cost_estimate=pl.CostEstimate(
            flops=3 * total,
            transcendentals=0,
            bytes_accessed=x.nbytes + y.nbytes + num_chunks * _SUBLANES * L * 4,
        ),
    )(x2, y2)

    # Tiny final reduction + 1/N scale in plain XLA.
    loss = jnp.sum(partials, dtype=jnp.float32) / jnp.float32(total)
    # Match torch.nn.functional.mse_loss: result carries the input dtype
    # (f32 accumulation is truncated only at the very end — intended).
    return loss.astype(x.dtype)


if __name__ == "__main__":
    key = jax.random.PRNGKey(0)

    def _check(shape):
        kx, ky = jax.random.split(jax.random.fold_in(key, hash(shape) % (2**31)))
        x = jax.random.normal(kx, shape, dtype=jnp.float32)
        y = jax.random.normal(ky, shape, dtype=jnp.float32)
        loss = content_loss(x, y)
        jax.block_until_ready(loss)
        ref = jnp.mean((x - y) ** 2)
        assert jnp.allclose(loss, ref, rtol=1e-5, atol=1e-6), (shape, loss, ref)

    # Primary small shape consistent with a conv-feature content loss (NCHW).
    _check((2, 4, 16, 16))
    # Ragged size (exercises zero-padding to the lane-dense layout).
    _check((2, 3, 17, 23))
    # Moderate size (exercises the multi-chunk "parallel" grid path).
    _check((2, 8, 256, 256))

    print("KERNEL_OK")
</pallas_src>

<mosaic_0001>
module attributes {stable_mosaic.version = 11 : i64} {
  func.func @_mse_partial_kernel(%arg0: i32, %arg1: i32, %arg2: memref<8x512xf32, #tpu.memory_space<vmem>>, %arg3: memref<8x512xf32, #tpu.memory_space<vmem>>, %arg4: memref<1x8x512xf32, #tpu.memory_space<vmem>>, %arg5: memref<8x512xf32, #tpu.memory_space<vmem>>) attributes {dimension_semantics = [#tpu.dimension_semantics<parallel>, #tpu.dimension_semantics<arbitrary>], iteration_bounds = array<i64: 1, 1>, scalar_prefetch = 0 : i64, scratch_operands = 1 : i64, tpu.core_type = #tpu.core_type<tc>, window_params = [{transform_indices = @transform_0, window_bounds = array<i64: 8, 512>}, {transform_indices = @transform_1, window_bounds = array<i64: 8, 512>}, {transform_indices = @transform_2, window_bounds = array<i64: 1, 8, 512>}]} {
    %c0_i32 = arith.constant 0 : i32
    %0 = arith.cmpi eq, %arg1, %c0_i32 : i32
    %1 = arith.extui %0 : i1 to i32
    %c0_i32_0 = arith.constant 0 : i32
    %2 = arith.cmpi ne, %1, %c0_i32_0 : i32
    scf.if %2 {
      %cst_10 = arith.constant 0.000000e+00 : f32
      %15 = vector.broadcast %cst_10 : f32 to vector<8x512xf32>
      %c0_11 = arith.constant 0 : index
      %c0_12 = arith.constant 0 : index
      %16 = vector.load %arg5[%c0_11, %c0_12] : memref<8x512xf32, #tpu.memory_space<vmem>>, vector<8x512xf32>
      tpu.vector_store %arg5[%c0_11, %c0_12], %15 {strides = array<i32>} : memref<8x512xf32, #tpu.memory_space<vmem>>, vector<8x512xf32>,
    } else {
    }
    %c0 = arith.constant 0 : index
    %c0_1 = arith.constant 0 : index
    %3 = vector.load %arg2[%c0, %c0_1] : memref<8x512xf32, #tpu.memory_space<vmem>>, vector<8x512xf32>
    %c0_2 = arith.constant 0 : index
    %c0_3 = arith.constant 0 : index
    %4 = vector.load %arg3[%c0_2, %c0_3] : memref<8x512xf32, #tpu.memory_space<vmem>>, vector<8x512xf32>
    %5 = arith.subf %3, %4 : vector<8x512xf32>
    %6 = arith.mulf %5, %5 : vector<8x512xf32>
    %c0_4 = arith.constant 0 : index
    %c0_5 = arith.constant 0 : index
    %7 = vector.load %arg5[%c0_4, %c0_5] : memref<8x512xf32, #tpu.memory_space<vmem>>, vector<8x512xf32>
    %8 = vector.shape_cast %6 : vector<8x512xf32> to vector<1x8x512xf32>
    %cst = arith.constant dense<0.000000e+00> : vector<8x512xf32>
    %9 = vector.multi_reduction <add>, %8, %cst [0] : vector<1x8x512xf32> to vector<8x512xf32>
    %10 = arith.addf %7, %9 : vector<8x512xf32>
    %c0_6 = arith.constant 0 : index
    %c0_7 = arith.constant 0 : index
    %11 = vector.load %arg5[%c0_6, %c0_7] : memref<8x512xf32, #tpu.memory_space<vmem>>, vector<8x512xf32>
    tpu.vector_store %arg5[%c0_6, %c0_7], %10 {strides = array<i32>} : memref<8x512xf32, #tpu.memory_space<vmem>>, vector<8x512xf32>,
    %c0_i32_8 = arith.constant 0 : i32
    %12 = arith.cmpi eq, %arg1, %c0_i32_8 : i32
    %13 = arith.extui %12 : i1 to i32
    %c0_i32_9 = arith.constant 0 : i32
    %14 = arith.cmpi ne, %13, %c0_i32_9 : i32
    scf.if %14 {
      %c0_10 = arith.constant 0 : index
      %c0_11 = arith.constant 0 : index
      %15 = vector.load %arg5[%c0_10, %c0_11] : memref<8x512xf32, #tpu.memory_space<vmem>>, vector<8x512xf32>
      %c0_12 = arith.constant 0 : index
      %c0_13 = arith.constant 0 : index
      %c0_14 = arith.constant 0 : index
      %16 = vector.load %arg4[%c0_12, %c0_13, %c0_14] : memref<1x8x512xf32, #tpu.memory_space<vmem>>, vector<1x8x512xf32>
      %17 = vector.shape_cast %16 : vector<1x8x512xf32> to vector<8x512xf32>
      %18 = vector.shape_cast %15 : vector<8x512xf32> to vector<1x8x512xf32>
      tpu.vector_store %arg4[%c0_12, %c0_13, %c0_14], %18 {strides = array<i32>} : memref<1x8x512xf32, #tpu.memory_space<vmem>>, vector<1x8x512xf32>,
    } else {
    }
    return
  }
  func.func @transform_0(%arg0: i32, %arg1: i32) -> (i32, i32) {
    %c1_i32 = arith.constant 1 : i32
    %0 = arith.muli %arg0, %c1_i32 : i32
    %1 = arith.addi %0, %arg1 : i32
    %c0_i32 = arith.constant 0 : i32
    %c0_i32_0 = arith.constant 0 : i32
    return %1, %c0_i32 : i32, i32
  }
  func.func @transform_1(%arg0: i32, %arg1: i32) -> (i32, i32) {
    %c1_i32 = arith.constant 1 : i32
    %0 = arith.muli %arg0, %c1_i32 : i32
    %1 = arith.addi %0, %arg1 : i32
    %c0_i32 = arith.constant 0 : i32
    %c0_i32_0 = arith.constant 0 : i32
    return %1, %c0_i32 : i32, i32
  }
  func.func @transform_2(%arg0: i32, %arg1: i32) -> (i32, i32, i32) {
    %c0_i32 = arith.constant 0 : i32
    %c0_i32_0 = arith.constant 0 : i32
    %c0_i32_1 = arith.constant 0 : i32
    return %arg0, %c0_i32, %c0_i32_0 : i32, i32, i32
  }
}

</mosaic_0001>

<bundles_post_ra>
// kernel: tpu_custom_call.1
= control target key start
LH: loop header
LB: loop body
LE: loop exit
PB: predicated region body
PF: predicated region fallthrough
CT: control target
= control target key end

     0   :  { %7 = vsyncpa [#allocation4], 0  ;;  %s242_s0 = inlined_call_operand.hbm [shape: f32[8,512], index: 0, kind: input, shape index: {}]   ;;  %s243_s1 = inlined_call_operand.hbm [shape: f32[8,512], index: 1, kind: input, shape index: {}]   ;;  %s244_s2 = inlined_call_operand.hbm [shape: f32[1,8,512], index: 2, kind: output, shape index: {}]  }
   0x1   :  { %8 = vsyncpa [#allocation7], 0 }
   0x2   :  { %9 = vsyncpa [#allocation5], 0  ;;  %s188_s9 = smov [#allocation3]   ;;  %s189_s11 = smov [#allocation6]  }
   0x3   :  { %s20_s10 = sshll.u32 %s188_s9, 4  ;;  %s34_s12 = sshll.u32 %s189_s11, 4  ;;  %s21_s10 = int_to_ptr.vmem [resolvable:$true] %s20_s10  ;;  %s35_s12 = int_to_ptr.vmem [resolvable:$true] %s34_s12 }
   0x4   :  { %s116_s15 = scalar_lea.hbm %s242_s0, 512 }
   0x5   :  { %p117_p0 = scmp.ne.s32.totalorder %s242_s0, %s116_s15  ;;  %p120_p1 = scmp.lt.u32.totalorder %s116_s15, %s242_s0 }
   0x7   :  { %p122_p2 = pnand %p120_p1, %p117_p0 }
   0x9   :  { %125 = shalt.err (!%p122_p2)
}
   0xa   :  { %s126_s20 = scalar_lea.vmem %s21_s10, 512  ;;  %p131_p4 = scmp.lt.s32.totalorder %s21_s10, %s21_s10 }
   0xb   :  { %p127_p3 = scmp.ne.s32.totalorder %s21_s10, %s126_s20  ;;  %p132_p5 = scmp.lt.s32.totalorder %s126_s20, %s126_s20 }
   0xd   :  { %p133_p6 = por %p132_p5, %p131_p4 }
   0xf   :  { %p134_p7 = pnand %p133_p6, %p127_p3 }
  0x11   :  { %137 = shalt.err (!%p134_p7)
}
  0x12   :  { %23 = dma.hbm_to_vmem [thread:$0]  %s242_s0, 512, %s21_s10, [#allocation4]  }
  0x13   :  { %s138_s25 = scalar_lea.hbm %s243_s1, 512 }
  0x14   :  { %p139_p8 = scmp.ne.s32.totalorder %s243_s1, %s138_s25  ;;  %p142_p9 = scmp.lt.u32.totalorder %s138_s25, %s243_s1 }
  0x16   :  { %p144_p10 = pnand %p142_p9, %p139_p8 }
  0x18   :  { %147 = shalt.err (!%p144_p10)
}
  0x19   :  { %s148_s30 = scalar_lea.vmem %s35_s12, 512  ;;  %p153_p12 = scmp.lt.s32.totalorder %s35_s12, %s35_s12 }
  0x1a   :  { %p149_p11 = scmp.ne.s32.totalorder %s35_s12, %s148_s30  ;;  %p154_p13 = scmp.lt.s32.totalorder %s148_s30, %s148_s30 }
  0x1c   :  { %p155_p0 = por %p154_p13, %p153_p12 }
  0x1e   :  { %p156_p1 = pnand %p155_p0, %p149_p11 }
  0x20   :  { %159 = shalt.err (!%p156_p1)
}
  0x21   :  { %37 = dma.hbm_to_vmem [thread:$0]  %s243_s1, 512, %s35_s12, [#allocation7]  }
  0x22   :  { %182 = dma.done.wait [#allocation4], 512  }
  0x23   :  { %183 = vsyncadd [#allocation4], 4294966784 }
  0x24   :  { %184 = dma.done.wait [#allocation7], 512  }
  0x25   :  { %185 = vsyncadd [#allocation7], 4294966784  ;;  %v54_v0 = vld [vmem:[#allocation3] sm:$0xff]  ;;  %v55_v2 = vld [vmem:[#allocation3 + $0x8] sm:$0xff]  ;;  %s190_s4 = smov [#allocation8]  }
  0x26   :  { %v58_v1 = vld [vmem:[#allocation6] sm:$0xff]  ;;  %v59_v4 = vld [vmem:[#allocation6 + $0x8] sm:$0xff]  ;;  %v56_v5 = vld [vmem:[#allocation3 + $0x10] sm:$0xff]  ;;  %s103_s5 = sshll.u32 %s190_s4, 4  ;;  %s104_s5 = int_to_ptr.vmem [resolvable:$true] %s103_s5 }
  0x27   :  { %v62_v3 = vsub.f32 %v54_v0, %v58_v1  ;;  %v60_v6 = vld [vmem:[#allocation6 + $0x10] sm:$0xff]  ;;  %v63_v7 = vsub.f32 %v55_v2, %v59_v4  ;;  %v57_v9 = vld [vmem:[#allocation3 + $0x18] sm:$0xff]  ;;  %s160_s1 = scalar_lea.vmem %s104_s5, 512  ;;  %p165_p3 = scmp.lt.s32.totalorder %s104_s5, %s104_s5 }
  0x28   :  { %v64_v8 = vsub.f32 %v56_v5, %v60_v6  ;;  %v61_v10 = vld [vmem:[#allocation6 + $0x18] sm:$0xff]  ;;  %p161_p2 = scmp.ne.s32.totalorder %s104_s5, %s160_s1  ;;  %p166_p4 = scmp.lt.s32.totalorder %s160_s1, %s160_s1 }
  0x29   :  { %v66_v11 = vmul.f32 %v62_v3, %v62_v3  ;;  %v65_v12 = vsub.f32 %v57_v9, %v61_v10  ;;  %v67_v13 = vmul.f32 %v63_v7, %v63_v7 }
  0x2a   :  { %v68_v14 = vmul.f32 %v64_v8, %v64_v8  ;;  %p167_p5 = por %p166_p4, %p165_p3 }
  0x2b   :  { %93 = vst [vmem:[#allocation8] sm:$0xff] %v66_v11  ;;  %v69_v15 = vmul.f32 %v65_v12, %v65_v12  ;;  %94 = vst [vmem:[#allocation8 + $0x8] sm:$0xff] %v67_v13 }
  0x2c   :  { %95 = vst [vmem:[#allocation8 + $0x10] sm:$0xff] %v68_v14  ;;  %p168_p6 = pnand %p167_p5, %p161_p2 }
  0x2d   :  { %96 = vst [vmem:[#allocation8 + $0x18] sm:$0xff] %v69_v15 }
  0x2e   :  { %171 = shalt.err (!%p168_p6)
}
  0x2f   :  { %s172_s8 = scalar_lea.hbm %s244_s2, 512 }
  0x30   :  { %p173_p7 = scmp.ne.s32.totalorder %s244_s2, %s172_s8  ;;  %p176_p8 = scmp.lt.u32.totalorder %s172_s8, %s244_s2 }
  0x32   :  { %p178_p9 = pnand %p176_p8, %p173_p7 }
  0x34   :  { %181 = shalt.err (!%p178_p9)
}
  0x35   :  { %106 = dma.vmem_to_hbm [thread:$0]  %s104_s5, 512, %s244_s2, [#allocation5]  }
  0x36   :  { %186 = dma.done.wait [#allocation5], 512  }
  0x37   :  { %187 = vsyncadd [#allocation5], 4294966784 }
  0x38   :  { %110 = vsyncpa [#allocation4], 1 }
  0x39   :  { %111 = vsyncpa [#allocation7], 1 }
  0x3a   :  { %112 = vsyncpa [#allocation5], 1 }

</bundles_post_ra>
